<compile_context>
chip_gen: v7x
topology: tpu7x:2x2x1
jax: 0.10.0
libtpu: 0.0.40
codegen_flags: <defaults>
</compile_context>

<pallas_src>
import jax
import jax.numpy as jnp
from jax.experimental import pallas as pl
from jax.experimental.pallas import tpu as pltpu


def _round_up(x, m):
    return ((x + m - 1) // m) * m


def _transform_kernel(inp_ref, noise_ref,
                      w1i_ref, w1n_ref, b1_ref,
                      w2_ref, b2_ref,
                      w3_ref, b3_ref,
                      o_ref):
    """One batch tile, transposed layout (features on sublanes, batch on lanes).

    inp_ref:   [f_inp,   TB]    noise_ref: [f_noise, TB]
    w1i_ref:   [d, f_inp]       w1n_ref:   [d, f_noise]    b1_ref: [d, 1]
    w2_ref:    [d, d]                                      b2_ref: [d, 1]
    w3_ref:    [out, d]                                    b3_ref: [out, 1]
    o_ref:     [out, TB]        (lane-dense stores: batch is the lane axis)
    """
    # fc1 with torch.cat fused:  W1 @ [inp; noise] == W1[:, :fi] @ inp + W1[:, fi:] @ noise
    h = (jnp.dot(w1i_ref[...], inp_ref[...], preferred_element_type=jnp.float32)
         + jnp.dot(w1n_ref[...], noise_ref[...], preferred_element_type=jnp.float32)
         + b1_ref[...])
    h = jnp.where(h >= 0, h, 0.1 * h)                       # leaky_relu(0.1)

    # fc2 + leaky_relu(0.1)
    h = jnp.dot(w2_ref[...], h, preferred_element_type=jnp.float32) + b2_ref[...]
    h = jnp.where(h >= 0, h, 0.1 * h)

    # fc3 + sigmoid * 20 - 10   (sigmoid goes to the EUP slot -> effectively free)
    y = jnp.dot(w3_ref[...], h, preferred_element_type=jnp.float32) + b3_ref[...]
    o_ref[...] = (jax.nn.sigmoid(y) * 20.0 - 10.0).astype(o_ref.dtype)


def transform_forward(inp, noise, params, *, block_batch=2048):
    """Forward pass of `Transform`.  params are in PyTorch layout (W:[out,in], b:[out])."""
    w1, b1, w2, b2, w3, b3 = params
    f_inp = inp.shape[1]
    f_noise = noise.shape[1]
    d = w1.shape[0]
    out_size = w3.shape[0]
    B = inp.shape[0]

    # Batch tiling: batch maps to lanes, so tiles must be multiples of 128.
    TB = _round_up(min(int(block_batch), _round_up(B, 128)), 128)
    B_pad = _round_up(B, TB)
    num_blocks = B_pad // TB

    # Transpose (free: feature dims are 1-2 wide) and zero-pad the batch axis.
    inp_t = jnp.pad(inp.T.astype(jnp.float32), ((0, 0), (0, B_pad - B)))
    noise_t = jnp.pad(noise.T.astype(jnp.float32), ((0, 0), (0, B_pad - B)))

    # Split fc1's weight so torch.cat(input, noise) is fused into the kernel.
    w1i = w1[:, :f_inp]
    w1n = w1[:, f_inp:f_inp + f_noise]
    b1c = b1.reshape(d, 1)
    b2c = b2.reshape(d, 1)
    b3c = b3.reshape(out_size, 1)

    # Weights/biases: constant index_map -> fetched once, resident across grid steps.
    weight_spec = lambda shape: pl.BlockSpec(shape, lambda i: (0, 0))
    batch_spec = lambda rows: pl.BlockSpec((rows, TB), lambda i: (0, i))

    n_weight_bytes = 4 * (w1.size + b1.size + w2.size + b2.size + w3.size + b3.size)
    cost = pl.CostEstimate(
        flops=2 * B_pad * (d * (f_inp + f_noise) + d * d + d * out_size),
        transcendentals=B_pad * out_size,                       # sigmoid
        bytes_accessed=4 * B_pad * (f_inp + f_noise + out_size) + n_weight_bytes,
    )

    out_t = pl.pallas_call(
        _transform_kernel,
        out_shape=jax.ShapeDtypeStruct((out_size, B_pad), jnp.float32),
        grid=(num_blocks,),
        in_specs=[
            batch_spec(f_inp),           # input  (transposed)
            batch_spec(f_noise),         # noise  (transposed)
            weight_spec((d, f_inp)),     # W1[:, :f_inp]
            weight_spec((d, f_noise)),   # W1[:, f_inp:]
            weight_spec((d, 1)),         # b1
            weight_spec((d, d)),         # W2
            weight_spec((d, 1)),         # b2
            weight_spec((out_size, d)),  # W3
            weight_spec((out_size, 1)),  # b3
        ],
        out_specs=batch_spec(out_size),
        compiler_params=pltpu.CompilerParams(
            dimension_semantics=("parallel",),   # shards batch tiles across TCs on v7x
        ),
        cost_estimate=cost,
    )(inp_t, noise_t, w1i, w1n, b1c, w2, b2c, w3, b3c)

    # Back to [B, out_size] row-major, matching the PyTorch module's output.
    return out_t[:, :B].T


def init_params(key, d=10, input_size=2, output_size=1):
    """Deterministic init mirroring the module: weights ~ N(0, 1), biases = 0 (PyTorch layout)."""
    k1, k2, k3 = jax.random.split(key, 3)
    w1 = jax.random.normal(k1, (d, input_size), dtype=jnp.float32)      # [out, in]
    w2 = jax.random.normal(k2, (d, d), dtype=jnp.float32)
    w3 = jax.random.normal(k3, (output_size, d), dtype=jnp.float32)
    b1 = jnp.zeros((d,), dtype=jnp.float32)
    b2 = jnp.zeros((d,), dtype=jnp.float32)
    b3 = jnp.zeros((output_size,), dtype=jnp.float32)
    return (w1, b1, w2, b2, w3, b3)


def transform_ref(inp, noise, params):
    """Pure-JAX reference for correctness checking (exactly the PyTorch math)."""
    w1, b1, w2, b2, w3, b3 = params
    x = jnp.concatenate([inp, noise], axis=1)
    h = x @ w1.T + b1
    h = jnp.where(h >= 0, h, 0.1 * h)
    h = h @ w2.T + b2
    h = jnp.where(h >= 0, h, 0.1 * h)
    h = h @ w3.T + b3
    return jax.nn.sigmoid(h) * 20.0 - 10.0


if __name__ == "__main__":
    key = jax.random.PRNGKey(0)
    k_params, k_in, k_noise = jax.random.split(key, 3)

    d, input_size, output_size = 10, 2, 1
    batch = 300   # not a multiple of 128 -> exercises batch padding + a multi-tile grid

    params = init_params(k_params, d=d, input_size=input_size, output_size=output_size)

    # input and noise each carry half of fc1's input features (1 + 1 = input_size)
    inp = jax.random.normal(k_in, (batch, input_size // 2), dtype=jnp.float32)
    noise = jax.random.normal(k_noise, (batch, input_size - input_size // 2),
                              dtype=jnp.float32)

    # block_batch=128 forces a 3-step grid at batch=300 so pipelining is exercised.
    out = jax.block_until_ready(transform_forward(inp, noise, params, block_batch=128))

    ref = transform_ref(inp, noise, params)
    assert out.shape == (batch, output_size)
    assert jnp.allclose(out, ref, atol=1e-4, rtol=1e-4), "Pallas output mismatch vs reference"

    print("KERNEL_OK")
</pallas_src>

<mosaic_0001>
module attributes {stable_mosaic.version = 11 : i64} {
  func.func @_transform_kernel(%arg0: i32, %arg1: memref<1x128xf32, #tpu.memory_space<vmem>>, %arg2: memref<1x128xf32, #tpu.memory_space<vmem>>, %arg3: memref<10x1xf32, #tpu.memory_space<vmem>>, %arg4: memref<10x1xf32, #tpu.memory_space<vmem>>, %arg5: memref<10x1xf32, #tpu.memory_space<vmem>>, %arg6: memref<10x10xf32, #tpu.memory_space<vmem>>, %arg7: memref<10x1xf32, #tpu.memory_space<vmem>>, %arg8: memref<1x10xf32, #tpu.memory_space<vmem>>, %arg9: memref<1x1xf32, #tpu.memory_space<vmem>>, %arg10: memref<1x128xf32, #tpu.memory_space<vmem>>) attributes {dimension_semantics = [#tpu.dimension_semantics<parallel>], iteration_bounds = array<i64: 3>, scalar_prefetch = 0 : i64, scratch_operands = 0 : i64, tpu.core_type = #tpu.core_type<tc>, window_params = [{transform_indices = @transform_0, window_bounds = array<i64: 1, 128>}, {transform_indices = @transform_1, window_bounds = array<i64: 1, 128>}, {pipeline_mode = #tpu.pipeline_mode<synchronous>, transform_indices = @transform_2, window_bounds = array<i64: 10, 1>}, {pipeline_mode = #tpu.pipeline_mode<synchronous>, transform_indices = @transform_3, window_bounds = array<i64: 10, 1>}, {pipeline_mode = #tpu.pipeline_mode<synchronous>, transform_indices = @transform_4, window_bounds = array<i64: 10, 1>}, {pipeline_mode = #tpu.pipeline_mode<synchronous>, transform_indices = @transform_5, window_bounds = array<i64: 10, 10>}, {pipeline_mode = #tpu.pipeline_mode<synchronous>, transform_indices = @transform_6, window_bounds = array<i64: 10, 1>}, {pipeline_mode = #tpu.pipeline_mode<synchronous>, transform_indices = @transform_7, window_bounds = array<i64: 1, 10>}, {pipeline_mode = #tpu.pipeline_mode<synchronous>, transform_indices = @transform_8, window_bounds = array<i64: 1, 1>}, {transform_indices = @transform_9, window_bounds = array<i64: 1, 128>}]} {
    %c0 = arith.constant 0 : index
    %c0_0 = arith.constant 0 : index
    %0 = vector.load %arg3[%c0, %c0_0] : memref<10x1xf32, #tpu.memory_space<vmem>>, vector<10x1xf32>
    %c0_1 = arith.constant 0 : index
    %c0_2 = arith.constant 0 : index
    %1 = vector.load %arg1[%c0_1, %c0_2] : memref<1x128xf32, #tpu.memory_space<vmem>>, vector<1x128xf32>
    %cst = arith.constant dense<0.000000e+00> : vector<10x128xf32>
    %2 = tpu.matmul %0, %1, %cst {dimension_numbers = #tpu.dot_dimension_numbers<[1], [0], [0], [1], [0, 0, 1, 1], [], []>} : vector<10x1xf32>, vector<1x128xf32>, vector<10x128xf32> -> vector<10x128xf32>
    %c0_3 = arith.constant 0 : index
    %c0_4 = arith.constant 0 : index
    %3 = vector.load %arg4[%c0_3, %c0_4] : memref<10x1xf32, #tpu.memory_space<vmem>>, vector<10x1xf32>
    %c0_5 = arith.constant 0 : index
    %c0_6 = arith.constant 0 : index
    %4 = vector.load %arg2[%c0_5, %c0_6] : memref<1x128xf32, #tpu.memory_space<vmem>>, vector<1x128xf32>
    %cst_7 = arith.constant dense<0.000000e+00> : vector<10x128xf32>
    %5 = tpu.matmul %3, %4, %cst_7 {dimension_numbers = #tpu.dot_dimension_numbers<[1], [0], [0], [1], [0, 0, 1, 1], [], []>} : vector<10x1xf32>, vector<1x128xf32>, vector<10x128xf32> -> vector<10x128xf32>
    %6 = arith.addf %2, %5 : vector<10x128xf32>
    %c0_8 = arith.constant 0 : index
    %c0_9 = arith.constant 0 : index
    %7 = vector.load %arg5[%c0_8, %c0_9] : memref<10x1xf32, #tpu.memory_space<vmem>>, vector<10x1xf32>
    %8 = vector.broadcast %7 : vector<10x1xf32> to vector<10x128xf32>
    %9 = arith.addf %6, %8 : vector<10x128xf32>
    %cst_10 = arith.constant 0.000000e+00 : f32
    %10 = vector.broadcast %cst_10 : f32 to vector<10x128xf32>
    %11 = arith.cmpf oge, %9, %10 : vector<10x128xf32>
    %cst_11 = arith.constant 1.000000e-01 : f32
    %12 = vector.broadcast %cst_11 : f32 to vector<10x128xf32>
    %13 = arith.mulf %12, %9 : vector<10x128xf32>
    %14 = arith.select %11, %9, %13 : vector<10x128xi1>, vector<10x128xf32>
    %c0_12 = arith.constant 0 : index
    %c0_13 = arith.constant 0 : index
    %15 = vector.load %arg6[%c0_12, %c0_13] : memref<10x10xf32, #tpu.memory_space<vmem>>, vector<10x10xf32>
    %cst_14 = arith.constant dense<0.000000e+00> : vector<10x128xf32>
    %16 = tpu.matmul %15, %14, %cst_14 {dimension_numbers = #tpu.dot_dimension_numbers<[1], [0], [0], [1], [0, 0, 1, 1], [], []>} : vector<10x10xf32>, vector<10x128xf32>, vector<10x128xf32> -> vector<10x128xf32>
    %c0_15 = arith.constant 0 : index
    %c0_16 = arith.constant 0 : index
    %17 = vector.load %arg7[%c0_15, %c0_16] : memref<10x1xf32, #tpu.memory_space<vmem>>, vector<10x1xf32>
    %18 = vector.broadcast %17 : vector<10x1xf32> to vector<10x128xf32>
    %19 = arith.addf %16, %18 : vector<10x128xf32>
    %cst_17 = arith.constant 0.000000e+00 : f32
    %20 = vector.broadcast %cst_17 : f32 to vector<10x128xf32>
    %21 = arith.cmpf oge, %19, %20 : vector<10x128xf32>
    %cst_18 = arith.constant 1.000000e-01 : f32
    %22 = vector.broadcast %cst_18 : f32 to vector<10x128xf32>
    %23 = arith.mulf %22, %19 : vector<10x128xf32>
    %24 = arith.select %21, %19, %23 : vector<10x128xi1>, vector<10x128xf32>
    %c0_19 = arith.constant 0 : index
    %c0_20 = arith.constant 0 : index
    %25 = vector.load %arg8[%c0_19, %c0_20] : memref<1x10xf32, #tpu.memory_space<vmem>>, vector<1x10xf32>
    %cst_21 = arith.constant dense<0.000000e+00> : vector<1x128xf32>
    %26 = tpu.matmul %25, %24, %cst_21 {dimension_numbers = #tpu.dot_dimension_numbers<[1], [0], [0], [1], [0, 0, 1, 1], [], []>} : vector<1x10xf32>, vector<10x128xf32>, vector<1x128xf32> -> vector<1x128xf32>
    %c0_22 = arith.constant 0 : index
    %c0_23 = arith.constant 0 : index
    %27 = vector.load %arg9[%c0_22, %c0_23] : memref<1x1xf32, #tpu.memory_space<vmem>>, vector<1x1xf32>
    %28 = vector.broadcast %27 : vector<1x1xf32> to vector<1x128xf32>
    %29 = arith.addf %26, %28 : vector<1x128xf32>
    %30 = arith.negf %29 : vector<1x128xf32>
    %31 = math.exp %30 : vector<1x128xf32>
    %cst_24 = arith.constant 1.000000e+00 : f32
    %32 = vector.broadcast %cst_24 : f32 to vector<1x128xf32>
    %33 = arith.addf %32, %31 : vector<1x128xf32>
    %34 = arith.divf %32, %33 : vector<1x128xf32>
    %cst_25 = arith.constant 2.000000e+01 : f32
    %35 = vector.broadcast %cst_25 : f32 to vector<1x128xf32>
    %36 = arith.mulf %34, %35 : vector<1x128xf32>
    %cst_26 = arith.constant 1.000000e+01 : f32
    %37 = vector.broadcast %cst_26 : f32 to vector<1x128xf32>
    %38 = arith.subf %36, %37 : vector<1x128xf32>
    %c0_27 = arith.constant 0 : index
    %c0_28 = arith.constant 0 : index
    %39 = vector.load %arg10[%c0_27, %c0_28] : memref<1x128xf32, #tpu.memory_space<vmem>>, vector<1x128xf32>
    tpu.vector_store %arg10[%c0_27, %c0_28], %38 {strides = array<i32>} : memref<1x128xf32, #tpu.memory_space<vmem>>, vector<1x128xf32>,
    return
  }
  func.func @transform_0(%arg0: i32) -> (i32, i32) {
    %c0_i32 = arith.constant 0 : i32
    %c0_i32_0 = arith.constant 0 : i32
    return %c0_i32, %arg0 : i32, i32
  }
  func.func @transform_1(%arg0: i32) -> (i32, i32) {
    %c0_i32 = arith.constant 0 : i32
    %c0_i32_0 = arith.constant 0 : i32
    return %c0_i32, %arg0 : i32, i32
  }
  func.func @transform_2(%arg0: i32) -> (i32, i32) {
    %c0_i32 = arith.constant 0 : i32
    %c0_i32_0 = arith.constant 0 : i32
    %c0_i32_1 = arith.constant 0 : i32
    return %c0_i32, %c0_i32_0 : i32, i32
  }
  func.func @transform_3(%arg0: i32) -> (i32, i32) {
    %c0_i32 = arith.constant 0 : i32
    %c0_i32_0 = arith.constant 0 : i32
    %c0_i32_1 = arith.constant 0 : i32
    return %c0_i32, %c0_i32_0 : i32, i32
  }
  func.func @transform_4(%arg0: i32) -> (i32, i32) {
    %c0_i32 = arith.constant 0 : i32
    %c0_i32_0 = arith.constant 0 : i32
    %c0_i32_1 = arith.constant 0 : i32
    return %c0_i32, %c0_i32_0 : i32, i32
  }
  func.func @transform_5(%arg0: i32) -> (i32, i32) {
    %c0_i32 = arith.constant 0 : i32
    %c0_i32_0 = arith.constant 0 : i32
    %c0_i32_1 = arith.constant 0 : i32
    return %c0_i32, %c0_i32_0 : i32, i32
  }
  func.func @transform_6(%arg0: i32) -> (i32, i32) {
    %c0_i32 = arith.constant 0 : i32
    %c0_i32_0 = arith.constant 0 : i32
    %c0_i32_1 = arith.constant 0 : i32
    return %c0_i32, %c0_i32_0 : i32, i32
  }
  func.func @transform_7(%arg0: i32) -> (i32, i32) {
    %c0_i32 = arith.constant 0 : i32
    %c0_i32_0 = arith.constant 0 : i32
    %c0_i32_1 = arith.constant 0 : i32
    return %c0_i32, %c0_i32_0 : i32, i32
  }
  func.func @transform_8(%arg0: i32) -> (i32, i32) {
    %c0_i32 = arith.constant 0 : i32
    %c0_i32_0 = arith.constant 0 : i32
    %c0_i32_1 = arith.constant 0 : i32
    return %c0_i32, %c0_i32_0 : i32, i32
  }
  func.func @transform_9(%arg0: i32) -> (i32, i32) {
    %c0_i32 = arith.constant 0 : i32
    %c0_i32_0 = arith.constant 0 : i32
    return %c0_i32, %arg0 : i32, i32
  }
}

</mosaic_0001>

<bundles_post_ra>
// kernel: tpu_custom_call.1
= control target key start
LH: loop header
LB: loop body
LE: loop exit
PB: predicated region body
PF: predicated region fallthrough
CT: control target
= control target key end

     0   :  { %s1207_s0 = inlined_call_operand.vmem [shape: f32[1,384], index: 0, kind: input, shape index: {}]   ;;  %s1208_s1 = inlined_call_operand.vmem [shape: f32[1,384], index: 1, kind: input, shape index: {}]   ;;  %s1209_s2 = inlined_call_operand.vmem [shape: f32[10,1], index: 2, kind: input, shape index: {}]   ;;  %s1210_s3 = inlined_call_operand.vmem [shape: f32[10,1], index: 3, kind: input, shape index: {}]   ;;  %s1211_s4 = inlined_call_operand.vmem [shape: f32[10,1], index: 4, kind: input, shape index: {}]   ;;  %s1212_s5 = inlined_call_operand.vmem [shape: f32[10,10], index: 5, kind: input, shape index: {}]   ;;  %s1213_s6 = inlined_call_operand.vmem [shape: f32[10,1], index: 6, kind: input, shape index: {}]   ;;  %s1214_s7 = inlined_call_operand.vmem [shape: f32[1,10], index: 7, kind: input, shape index: {}]   ;;  %s1215_s8 = inlined_call_operand.<no memory space> [shape: f32[1,1], index: 8, kind: input, shape index: {}]   ;;  %s1216_s9 = inlined_call_operand.hbm [shape: f32[1,384], index: 9, kind: output, shape index: {}]  }
   0x1   :  { %v14_v0 = vstv %s1215_s8 }
   0x2   :  { %15 = vst [vmem:[#allocation2] sm:$0x1] %v14_v0 }
   0x3   :  { %16 = vsyncpa [#allocation4], 0 }
   0x4   :  { %18 = vsyncpa [#allocation4 + $0x1], 0  ;;  %s1054_s11 = smov 0   ;;  %s1056_s12 = smov 0  }
   0x5   :  { %s1058_s13 = smov 0   ;;  %s1060_s14 = smov 0  }
   0x6 LB: > { %s1075_s8 = sadd.s32 4294967295, %s993_s14   ;;  %s812_s15 = sadd.s32 4294967294, %s993_s14   ;;  %s993_s14 = sphi %s1060_s14, %s1224_s14   ;;  %s989_s13 = sphi %s1058_s13, %s1223_s13   ;;  %s985_s12 = sphi %s1056_s12, %s1222_s12   ;;  %s981_s11 = sphi %s1054_s11, %s1221_s11  }
   0x7   : > { %s1079_s16 = sadd.s32 1, %s993_s14   ;;  %s230_s17 = sadd.s32 1, %s989_s13 }
   0x8   : > { %s227_s18 = ssub.s32 %s993_s14, %s1079_s16  ;;  %p240_p0 = scmp.ne.s32.totalorder %s989_s13, %s985_s12 }
   0x9   : > { %p228_p1 = scmp.eq.s32.totalorder %s227_s18, 0  ;;  %p241_p2 = scmp.eq.s32.totalorder %s1075_s8, 2 }
   0xa   : > { %p246_p3 = scmp.ne.s32.totalorder %s985_s12, %s981_s11  ;;  %p247_p4 = scmp.eq.s32.totalorder %s812_s15, 2 }
   0xb   : > { %s1090_s19 = scalar_select %p228_p1, %s989_s13, %s230_s17  }
   0xc   : > { %p1092_p5 = por %p241_p2, %p240_p0  ;;  %p1096_p6 = por %p247_p4, %p246_p3 }
   0xd   : > { %p815_p7 = scmp.ge.s32.totalorder %s993_s14, 1  ;;  %p298_p8 = scmp.lt.s32.totalorder %s993_s14, 4 }
   0xf   : > { %p299_p9 = pnand %p815_p7, %p298_p8 }
  0x10   : > { %p334_p10 = scmp.lt.s32.totalorder (!%p299_p9), %s1075_s8, 2  ;;  %v343_v1 = vld [vmem:[%s1210_s3] sm:$0xff] (!%p299_p9)  ;;  %vm346_vm0 = vcmask (!%p299_p9), 7168   ;;  %v995_v3 = vmov (!%p299_p9), 0   ;;  %vm353_vm1 = vcmask (!%p299_p9), 1040384   ;;  %vm550_vm2 = vcmask (!%p299_p9), 80896  }
  0x11   : > { %302 = sbr.rel (%p299_p9) target bundleno = 743 (0x2e7), region = 56  ;;  %847 = vmatprep.mubr.msk.f32.mxu0 (!%p299_p9), %vm346_vm0, %v343_v1  ;;  %v516_v2 = vld [vmem:[%s1211_s4] sm:$0xff] (!%p299_p9)  ;;  %925 = vset.pattern.permute.xlu0 (!%p299_p9), %v995_v3  ;;  %v517_v4 = vld [vmem:[%s1211_s4 + $0x8] sm:$0x3] (!%p299_p9)  ;;  %vm557_vm4 = vcmask (!%p299_p9), 1041408   ;;  %vm996_vm6 = vmmov (!%p299_p9), 1   ;;  %v649_v41 = vlaneseq (!%p299_p9) }
  0x12   : > { %926 = vset.pattern.permute.xlu1 (!%p299_p9), %v995_v3  ;;  %520 = vperm.xlu0 (!%p299_p9), %925, %v516_v2   ;;  %v344_v6 = vld [vmem:[%s1210_s3 + $0x8] sm:$0x3] (!%p299_p9)  ;;  %v340_v8 = vld [vmem:[%s1209_s2] sm:$0xff] (!%p299_p9)  ;;  %vm1142_vm7 = vmpackc.low (!%p299_p9), %vm557_vm4, %vm996_vm6  ;;  %v997_v27 = vmov (!%p299_p9), 0.0|0.0   ;;  %vm998_vm8 = vmmov (!%p299_p9), 0   ;;  %v999_v28 = vmov (!%p299_p9), 0.0  }
  0x13   : > { %v643_v9 = vld [vmem:[#allocation2] sm:$0x1] (!%p299_p9)  ;;  %v341_v10 = vld [vmem:[%s1209_s2 + $0x8] sm:$0x3] (!%p299_p9)  ;;  %v650_v42 = vshrl.u32 (!%p299_p9), %v649_v41, 7  ;;  %s332_s25 = sand.u32 (!%p299_p9), 1, %s985_s12  }
  0x14   : > { %v536_v11 = vld [vmem:[%s1212_s5] sm:$0xff] (!%p299_p9)  ;;  %v539_v13 = vld [vmem:[%s1213_s6 + $0x8] sm:$0x3] (!%p299_p9)  ;;  %s333_s27 = scalar_lea.vmem (!%p299_p9), [#allocation3], %s332_s25 }
  0x15   : > { %859 = vmatprep.mubr.msk.f32.mxu1 (!%p299_p9), %vm550_vm2, %v536_v11  ;;  %v538_v12 = vld [vmem:[%s1213_s6] sm:$0xff] (!%p299_p9)  ;;  %v537_v26 = vld [vmem:[%s1212_s5 + $0x8] sm:$0x3] (!%p299_p9)  ;;  %v651_v43 = vsub.s32 (!%p299_p9), 0, %v650_v42  ;;  %s751_s28 = sshll.u32 (!%p299_p9), %s333_s27, 4  ;;  %s1167_s28 = int_to_ptr.vmem [resolvable:$true] %s751_s28 }
  0x16   : > { %525 = vperm.xlu0 (!%p299_p9), %925, %v517_v4   ;;  %542 = vperm.xlu1 (!%p299_p9), %926, %v538_v12   ;;  %v642_v40 = vld [vmem:[%s1214_s7] sm:$0x1] (!%p299_p9)  ;;  %s931_s17 = scalar_lea.vmem (!%p299_p9), %s1167_s28, 16 }
  0x17   : > { %p932_p11 = scmp.ne.s32.totalorder (!%p299_p9), %s1167_s28, %s931_s17 }
  0x18   : > { %s335_s26 = scalar_select %p334_p10, %s1075_s8, 2 }
  0x19   : > { %p933_p12 = pnand %p932_p11, %p1092_p5 }
  0x1a   : > { %s339_s29 = scalar_lea.vmem %s1208_s1, %s335_s26  ;;  %s336_s15 = scalar_lea.vmem %s1207_s0, %s335_s26  ;;  %646 = vperm.xlu0 %925, %v643_v9   ;;  %547 = vperm.xlu1 %926, %v539_v13  }
  0x1b   : > { %v345_v5 = vld [vmem:[%s339_s29] sm:$0x1]  ;;  %s829_s26 = sshll.u32 %s1075_s8, 4  ;;  %p934_p13 = pneg %p933_p12 }
  0x1c   : > { %v342_v7 = vld [vmem:[%s336_s15] sm:$0x1]  ;;  %845 = vmatprep.subr.msk.mxu0 %vm353_vm1, %v345_v5  ;;  %s1165_s10 = scalar_lea.hbm %s1216_s9, %s829_s26  ;;  %s739_s15 = scalar_lea.sflag [#allocation4], %s332_s25 }
  0x1d   : > { %846 = vmatpush3.msk.msra.mxu0 %vm353_vm1, %v345_v5  ;;  %s1000_s8 = smov [#allocation3]  }
  0x1e   : > { %848 = vmatmul.mubr.msk.f32.vlgmr.msra.gmra.mrb[0].mxu0 %vm346_vm0, %v344_v6  ;;  %850 = vmatprep.subr.msk.mxu0 %vm353_vm1, %v342_v7  ;;  %s935_s18 = sshll.u32 %s1000_s8, 4  ;;  %s936_s18 = int_to_ptr.vmem [resolvable:$false] %s935_s18 }
  0x1f   : > { %851 = vmatpush3.msk.msra.mxu0 %vm353_vm1, %v342_v7  ;;  %852 = vmatprep.mubr.msk.f32.mxu0 %vm346_vm0, %v340_v8  ;;  %s937_s22 = scalar_lea.vmem %s936_s18, 32  ;;  %p938_p0 = scmp.lt.s32.totalorder %s1167_s28, %s936_s18 }
  0x20   : > { %p939_p1 = scmp.lt.s32.totalorder %s937_s22, %s931_s17 }
  0x22   : > { %p940_p2 = por %p939_p1, %p938_p0 }
  0x24   : > { %p941_p3 = pnand %p940_p2, %p934_p13 }
  0x26   : > { %853 = vmatmul.mubr.msk.f32.vlgmr.msra.gmra.mrb[0].mxu0 %vm346_vm0, %v341_v10 }
  0x91   : > { %v521_v14 = vpop.permute.xlu0 %520 }
  0x95   : > { %v526_v15 = vpop.permute.xlu0 %525  ;;  %v543_v29 = vpop.permute.xlu1 %542 }
  0x99   : > { %v548_v30 = vpop.permute.xlu1 %547  ;;  %v647_v44 = vpop.permute.xlu0 %646 }
  0x9a   : > { %v652_v45 = vrot.slane %v647_v44, %v651_v43 }
  0xf9   : > { %v854_v16 = vpop.f32.mrb[0].mxu0 }
  0xfa   : > { %v529_v17 = vadd.f32 %v854_v16, %v526_v15  ;;  %v507_v18 = vpop.f32.mrb[1].mxu0 }
  0xfb   : > { %v528_v19 = vadd.f32 %v521_v14, %v507_v18 }
  0xfc   : > { %v533_v20 = vmul.f32 0.1, %v529_v17  ;;  %vm531_vm3 = vcmp.ge.f32.partialorder %v529_v17, 0.0 }
  0xfd   : > { %v532_v21 = vmul.f32 0.1, %v528_v19  ;;  %vm530_vm5 = vcmp.ge.f32.partialorder %v528_v19, 0.0 }
  0xfe   : > { %v535_v22 = vsel %vm531_vm3, %v529_v17, %v533_v20 }
  0xff   : > { %v534_v23 = vsel %vm530_vm5, %v528_v19, %v532_v21 }
 0x100   : > { %v869_v25 = vpack.c.bf16 %v535_v22, %v534_v23 }
 0x102   : > { %871 = vmatprep.subr.msk.bf16.mxu1 %vm1142_vm7, %v869_v25 }
 0x103   : > { %874 = vmatpush3.bf16.msk.msra.mxu1 %vm1142_vm7, %v869_v25 }
 0x104   : > { %875 = vmatprep.subr.bf16.mxu1 %v997_v27 }
 0x106   : > { %860 = vmatmul.mubr.msk.f32.vlgmr.msra.gmra.mrb[0].mxu1 %vm550_vm2, %v537_v26 }
 0x107   : > { %866 = vmatprep.mubr.msk.f32.mxu1 %vm998_vm8, %v999_v28 }
 0x1d9   : > { %v861_v31 = vpop.f32.mrb[0].mxu1 }
 0x1da   : > { %v633_v32 = vadd.f32 %v861_v31, %v548_v30  ;;  %v627_v33 = vpop.f32.mrb[1].mxu1 }
 0x1db   : > { %v628_v34 = vadd.f32 %v627_v33, %v543_v29 }
 0x1dc   : > { %vm637_vm9 = vcmp.ge.f32.partialorder %v633_v32, 0.0  ;;  %v639_v35 = vmul.f32 0.1, %v633_v32 }
 0x1dd   : > { %vm636_vm10 = vcmp.ge.f32.partialorder %v628_v34, 0.0  ;;  %v638_v36 = vmul.f32 0.1, %v628_v34 }
 0x1de   : > { %v641_v37 = vsel %vm637_vm9, %v633_v32, %v639_v35 }
 0x1df   : > { %v640_v38 = vsel %vm636_vm10, %v628_v34, %v638_v36 }
 0x1e0   : > { %v876_v39 = vpack.c.bf16 %v641_v37, %v640_v38 }
 0x1e2   : > { %878 = vmatpush3.bf16.msk.msra.mxu1 %vm1142_vm7, %v876_v39 }
 0x1e5   : > { %867 = vmatmul.mubr.msk.f32.vlgmr.msra.gmra.mrb[2].mxu1 %vm550_vm2, %v642_v40 }
 0x2b8   : > { %v725_v46 = vpop.f32.mrb[2].mxu1 }
 0x2b9   : > { %v726_v47 = vadd.f32 %v725_v46, %v652_v45  ;;  %v868_v48 = vpop.f32.mrb[3].mxu1 }
 0x2bb   : > { %v827_v49 = vmul.f32 -1.442695, %v726_v47 }
 0x2bd   : > { %927 = vpow2.f32 %v827_v49 }
 0x2c7   : > { %v928_v50 = vpop.eup %927 }
 0x2c8   : > { %v732_v51 = vadd.f32 1.0, %v928_v50 }
 0x2ca   : > { %929 = vrcp.f32 %v732_v51 }
 0x2d4   : > { %v930_v52 = vpop.eup %929 }
 0x2d5   : > { %v735_v53 = vmul.f32 20.0, %v930_v52 }
 0x2d7   : > { %v828_v54 = vadd.f32 -10.0, %v735_v53 }
 0x2d9   : > { %737 = vst [vmem:[%s333_s27] sm:$0x1] %v828_v54 }
 0x2da   : > { %944 = shalt.err (!%p941_p3)
}
 0x2db   : > { %s945_s23 = scalar_lea.hbm %s1165_s10, 16  ;;  %s949_s26 = scalar_lea.hbm %s1216_s9, 48 }
 0x2dc   : > { %p946_p4 = scmp.ne.s32.totalorder %s1165_s10, %s945_s23  ;;  %p950_p9 = scmp.lt.u32.totalorder %s1165_s10, %s1216_s9 }
 0x2dd   : > { %p951_p10 = scmp.lt.u32.totalorder %s949_s26, %s945_s23  ;;  %p953_p12 = scmp.lt.u32.totalorder %s945_s23, %s1165_s10 }
 0x2de   : > { %p947_p7 = pnand %p946_p4, %p1092_p5 }
 0x2df   : > { %p952_p11 = por %p951_p10, %p950_p9 }
 0x2e0   : > { %p948_p8 = pneg %p947_p7 }
 0x2e1   : > { %p954_p13 = por %p953_p12, %p952_p11 }
 0x2e3   : > { %p955_p0 = pnand %p954_p13, %p948_p8 }
 0x2e5   : > { %958 = shalt.err (!%p955_p0)
}
 0x2e6   : > { %881 = dma.vmem_to_hbm [thread:$0]  (%p1092_p5), %s1167_s28, 16, %s1165_s10, %s739_s15  }
 0x2e7 PF: > { %p887_p1 = scmp.ge.s32.totalorder %s993_s14, 2  ;;  %s763_s30 = sand.u32 1, %s981_s11  }
 0x2e8   : > { %s764_s17 = scalar_lea.sflag [#allocation4], %s763_s30 }
 0x2e9   : > { %p884_p2 = pnand %p887_p1, %p1096_p6 }
 0x2eb   : > { %976 = dma.done.wait (!%p884_p2), %s764_s17, 16  }
 0x2ec   : > { %978 = vsyncadd (!%p884_p2), %s764_s17, 4294967280  ;;  %p21_p3 = scmp.ge.s32.totalorder %s1079_s16, 5   ;;  %s1221_s11 = smov %s985_s12 }
 0x2ed   : > { %s1222_s12 = smov %s989_s13  ;;  %s1223_s13 = smov %s1090_s19 }
 0x2ee   : > { %s1224_s14 = smov %s1079_s16  ;;  %23 = sbr.rel (!%p21_p3) target bundleno = 6 (0x6), region = 94 }
 0x2f5   :  { %768 = vsyncpa [#allocation4], 1 }
 0x2f6   :  { %770 = vsyncpa [#allocation4 + $0x1], 1 }

</bundles_post_ra>
